<compile_context>
chip_gen: v7x
topology: tpu7x:2x2x1
jax: 0.10.0
libtpu: 0.0.40
codegen_flags: <defaults>
</compile_context>

<pallas_src>
import functools

import jax
import jax.numpy as jnp
from jax.experimental import pallas as pl
from jax.experimental.pallas import tpu as pltpu

LANE = 128


def _rmsnorm_kernel(x_ref, params_ref, o_ref, *, eps: float):
    # x_ref:      (tm, dim) tile of input rows (dim = full feature axis).
    # params_ref: (2, dim) f32: row 0 = scale, row 1 = 1/scale (precomputed).
    x = x_ref[...].astype(jnp.float32)
    sumsq = jnp.sum(x * x, axis=-1, keepdims=True)        # (tm, 1)
    norm = jnp.sqrt(sumsq)                                 # (tm, 1)
    inv_norm = jax.lax.rsqrt(sumsq)                        # (tm, 1); inf row -> masked below

    scale = params_ref[0:1, :]                             # (1, dim) f32
    inv_scale = params_ref[1:2, :]                         # (1, dim) f32

    # y = x / max(scale*norm, eps)
    #   = x * (1/eps)                 where scale*norm <= eps  (incl. scale <= 0)
    #   = x * inv_norm * inv_scale    otherwise
    factor = jnp.where(scale * norm <= eps, 1.0 / eps, inv_norm * inv_scale)
    o_ref[...] = (x * factor).astype(o_ref.dtype)


def _round_up(x: int, m: int) -> int:
    return ((x + m - 1) // m) * m


def _vmem_capacity_bytes() -> int:
    try:
        return int(pltpu.get_tpu_info().vmem_capacity_bytes)
    except Exception:
        return 64 * 1024 * 1024  # conservative per-TensorCore default (v7x)


def _choose_tiling(rows: int, dim: int, itemsize: int):
    # Sublane granularity: 8 rows (32-bit), 16 (16-bit), 32 (8-bit).
    sub = 8 if itemsize >= 4 else (16 if itemsize == 2 else 32)
    dim_lanes = _round_up(dim, LANE)          # physical lane footprint per row
    row_in_bytes = dim_lanes * itemsize
    row_f32_bytes = dim_lanes * 4

    vmem = _vmem_capacity_bytes()
    # Per-row VMEM footprint: double-buffered in + out tiles, plus ~2 live f32
    # intermediates (x upcast and the product / factor tile).
    per_row = 2 * row_in_bytes * 2 + 2 * row_f32_bytes
    budget = int(vmem * 0.40)

    # Target ~4 MiB input tiles (amortizes the ~0.35us per-grid-step overhead),
    # capped by the VMEM budget and a 16K-row ceiling.
    target_rows = (4 * 1024 * 1024) // max(row_in_bytes, 1)
    cap_rows = budget // max(per_row, 1)
    tm = min(target_rows, cap_rows, 16384)
    tm = max(sub, (tm // sub) * sub)
    tm = min(tm, _round_up(rows, sub))

    # Keep >= 8 grid steps when there is enough work so the parallel axis can
    # be balanced across both TensorCores on v7x (no-op on v5e/v6e).
    min_steps = 8
    if rows >= min_steps * sub and pl.cdiv(rows, tm) < min_steps:
        tm = max(sub, (pl.cdiv(rows, min_steps) // sub) * sub)

    # Scoped VMEM limit: cover the tiles + intermediates with headroom, capped
    # at 75% of the per-core capacity (<= 48 MiB on v7x, <= 96 MiB on v5e/v6e).
    needed = tm * per_row + 4 * dim_lanes * 4
    vmem_limit = min(max(needed + needed // 4, 16 * 1024 * 1024),
                     int(vmem * 0.75))
    return tm, vmem_limit


def rms_norm_pallas(x: jax.Array, scale: jax.Array, eps: float = 1e-8) -> jax.Array:
    """RMSNorm over the last axis of x. scale has shape (dim,)."""
    orig_shape = x.shape
    dim = orig_shape[-1]
    assert scale.shape == (dim,)

    x2d = x.reshape(-1, dim)
    rows = x2d.shape[0]
    itemsize = jnp.dtype(x.dtype).itemsize

    tm, vmem_limit = _choose_tiling(rows, dim, itemsize)
    grid = (pl.cdiv(rows, tm),)

    # Tiny (dim,)-sized precompute in the wrapper (not an extra pass over x):
    # row 0 = scale in f32, row 1 = 1/scale (inf where scale == 0 is never
    # selected because those channels fall into the eps-clamp branch).
    scale_f32 = scale.astype(jnp.float32)
    params = jnp.stack([scale_f32, 1.0 / scale_f32], axis=0)   # (2, dim)

    out = pl.pallas_call(
        functools.partial(_rmsnorm_kernel, eps=float(eps)),
        out_shape=jax.ShapeDtypeStruct((rows, dim), x.dtype),
        grid_spec=pltpu.PrefetchScalarGridSpec(
            num_scalar_prefetch=0,
            grid=grid,
            in_specs=[
                pl.BlockSpec((tm, dim), lambda i: (i, 0)),   # x row-tile (full dim)
                pl.BlockSpec((2, dim), lambda i: (0, 0)),    # scale / inv_scale
            ],
            out_specs=pl.BlockSpec((tm, dim), lambda i: (i, 0)),
        ),
        compiler_params=pltpu.CompilerParams(
            dimension_semantics=("parallel",),
            vmem_limit_bytes=vmem_limit,
        ),
    )(x2d, params)

    return out.reshape(orig_shape)


def rms_norm_reference(x, scale, eps=1e-8):
    xf = x.astype(jnp.float32)
    norm = jnp.sqrt(jnp.sum(xf * xf, axis=-1, keepdims=True))
    denom = jnp.maximum(scale.astype(jnp.float32) * norm, eps)
    return (xf / denom).astype(x.dtype)


if __name__ == "__main__":
    key = jax.random.PRNGKey(0)

    batch, seq, dim = 2, 8, 32
    x = jax.random.normal(key, (batch, seq, dim), dtype=jnp.float32)

    # Deterministic parameter init, matching nn.Parameter(torch.ones(dim) * dim**-0.5)
    scale = jnp.ones((dim,), dtype=jnp.float32) * (dim ** -0.5)

    y = rms_norm_pallas(x, scale, eps=1e-8)
    jax.block_until_ready(y)

    y_ref = rms_norm_reference(x, scale, eps=1e-8)
    assert y.shape == x.shape and y.dtype == x.dtype
    assert jnp.allclose(y, y_ref, atol=1e-5, rtol=1e-5)

    print("KERNEL_OK")
</pallas_src>

<mosaic_0001>
module attributes {stable_mosaic.version = 11 : i64} {
  func.func @_rmsnorm_kernel(%arg0: i32, %arg1: memref<16x32xf32, #tpu.memory_space<vmem>>, %arg2: memref<2x32xf32, #tpu.memory_space<vmem>>, %arg3: memref<16x32xf32, #tpu.memory_space<vmem>>) attributes {dimension_semantics = [#tpu.dimension_semantics<parallel>], iteration_bounds = array<i64: 1>, scalar_prefetch = 0 : i64, scratch_operands = 0 : i64, tpu.core_type = #tpu.core_type<tc>, window_params = [{transform_indices = @transform_0, window_bounds = array<i64: 16, 32>}, {pipeline_mode = #tpu.pipeline_mode<synchronous>, transform_indices = @transform_1, window_bounds = array<i64: 2, 32>}, {transform_indices = @transform_2, window_bounds = array<i64: 16, 32>}]} {
    %c0 = arith.constant 0 : index
    %c0_0 = arith.constant 0 : index
    %0 = vector.load %arg1[%c0, %c0_0] : memref<16x32xf32, #tpu.memory_space<vmem>>, vector<16x32xf32>
    %1 = arith.mulf %0, %0 : vector<16x32xf32>
    %cst = arith.constant dense<0.000000e+00> : vector<16xf32>
    %2 = vector.multi_reduction <add>, %1, %cst [1] : vector<16x32xf32> to vector<16xf32>
    %3 = vector.shape_cast %2 : vector<16xf32> to vector<16x1xf32>
    %4 = math.sqrt %3 : vector<16x1xf32>
    %5 = math.rsqrt %3 : vector<16x1xf32>
    %c0_1 = arith.constant 0 : index
    %c0_2 = arith.constant 0 : index
    %6 = vector.load %arg2[%c0_1, %c0_2] : memref<2x32xf32, #tpu.memory_space<vmem>>, vector<1x32xf32>
    %c1 = arith.constant 1 : index
    %c0_3 = arith.constant 0 : index
    %7 = vector.load %arg2[%c1, %c0_3] : memref<2x32xf32, #tpu.memory_space<vmem>>, vector<1x32xf32>
    %8 = vector.broadcast %6 : vector<1x32xf32> to vector<16x32xf32>
    %9 = vector.broadcast %4 : vector<16x1xf32> to vector<16x32xf32>
    %10 = arith.mulf %8, %9 : vector<16x32xf32>
    %cst_4 = arith.constant 9.99999993E-9 : f32
    %11 = vector.broadcast %cst_4 : f32 to vector<16x32xf32>
    %12 = arith.cmpf ole, %10, %11 : vector<16x32xf32>
    %13 = vector.broadcast %5 : vector<16x1xf32> to vector<16x32xf32>
    %14 = vector.broadcast %7 : vector<1x32xf32> to vector<16x32xf32>
    %15 = arith.mulf %13, %14 : vector<16x32xf32>
    %cst_5 = arith.constant 1.000000e+08 : f32
    %16 = vector.broadcast %cst_5 : f32 to vector<16x32xf32>
    %17 = arith.select %12, %16, %15 : vector<16x32xi1>, vector<16x32xf32>
    %18 = arith.mulf %0, %17 : vector<16x32xf32>
    %c0_6 = arith.constant 0 : index
    %c0_7 = arith.constant 0 : index
    %19 = vector.load %arg3[%c0_6, %c0_7] : memref<16x32xf32, #tpu.memory_space<vmem>>, vector<16x32xf32>
    tpu.vector_store %arg3[%c0_6, %c0_7], %18 {strides = array<i32>} : memref<16x32xf32, #tpu.memory_space<vmem>>, vector<16x32xf32>,
    return
  }
  func.func @transform_0(%arg0: i32) -> (i32, i32) {
    %c0_i32 = arith.constant 0 : i32
    %c0_i32_0 = arith.constant 0 : i32
    return %arg0, %c0_i32 : i32, i32
  }
  func.func @transform_1(%arg0: i32) -> (i32, i32) {
    %c0_i32 = arith.constant 0 : i32
    %c0_i32_0 = arith.constant 0 : i32
    %c0_i32_1 = arith.constant 0 : i32
    return %c0_i32, %c0_i32_0 : i32, i32
  }
  func.func @transform_2(%arg0: i32) -> (i32, i32) {
    %c0_i32 = arith.constant 0 : i32
    %c0_i32_0 = arith.constant 0 : i32
    return %arg0, %c0_i32 : i32, i32
  }
}

</mosaic_0001>

<bundles_post_ra>
// kernel: tpu_custom_call.1
= control target key start
LH: loop header
LB: loop body
LE: loop exit
PB: predicated region body
PF: predicated region fallthrough
CT: control target
= control target key end

     0   :  { %7 = vsyncpa [#allocation3], 0  ;;  %s209_s0 = inlined_call_operand.hbm [shape: f32[16,32], index: 0, kind: input, shape index: {}]   ;;  %s210_s1 = inlined_call_operand.vmem [shape: f32[2,32], index: 1, kind: input, shape index: {}]   ;;  %s211_s2 = inlined_call_operand.hbm [shape: f32[16,32], index: 2, kind: output, shape index: {}]  }
   0x1   :  { %8 = vsyncpa [#allocation4], 0  ;;  %s150_s9 = smov [#allocation2]   ;;  %s102_s13 = scalar_lea.hbm %s209_s0, 256 }
   0x2   :  { %s14_s10 = sshll.u32 %s150_s9, 4  ;;  %p103_p0 = scmp.ne.s32.totalorder %s209_s0, %s102_s13  ;;  %s15_s10 = int_to_ptr.vmem [resolvable:$true] %s14_s10 }
   0x3   :  { %p106_p1 = scmp.lt.u32.totalorder %s102_s13, %s209_s0 }
   0x5   :  { %p108_p2 = pnand %p106_p1, %p103_p0 }
   0x7   :  { %111 = shalt.err (!%p108_p2)
}
   0x8   :  { %s112_s18 = scalar_lea.vmem %s15_s10, 256  ;;  %p117_p4 = scmp.lt.s32.totalorder %s15_s10, %s15_s10 }
   0x9   :  { %p113_p3 = scmp.ne.s32.totalorder %s15_s10, %s112_s18  ;;  %p118_p5 = scmp.lt.s32.totalorder %s112_s18, %s112_s18 }
   0xb   :  { %p119_p6 = por %p118_p5, %p117_p4 }
   0xd   :  { %p120_p7 = pnand %p119_p6, %p113_p3 }
   0xf   :  { %123 = shalt.err (!%p120_p7)
}
  0x10   :  { %s151_s19 = smov 128   ;;  %s152_s20 = smov 8  }
  0x11   :  { %20 = dma.hbm_to_vmem [thread:$0]  %s209_s0, 256, %s15_s10, [#allocation3], %s151_s19, %s151_s19, %s152_s20  }
  0x12   :  { %146 = dma.done.wait [#allocation3], 256  }
  0x13   :  { %147 = vsyncadd [#allocation3], 4294967040  ;;  %v26_v0 = vld [vmem:[#allocation2] sm:$0xff]  ;;  %vm30_vm0 = vcmask 261120   ;;  %v27_v1 = vld [vmem:[#allocation2 + $0x8] sm:$0xff]  ;;  %s153_s26 = smov [#allocation5]  }
  0x14   :  { %v28_v2 = vmul.f32 %v26_v0, %v26_v0  ;;  %v29_v3 = vmul.f32 %v27_v1, %v27_v1  ;;  %v92_v11 = vld [vmem:[%s210_s1] ss:$0 sm:$0xff]  ;;  %v93_v13 = vld [vmem:[%s210_s1 + $0x1] ss:$0 sm:$0xff]  ;;  %s80_s27 = sshll.u32 %s153_s26, 4  ;;  %s81_s27 = int_to_ptr.vmem [resolvable:$true] %s80_s27 }
  0x15   :  { %s124_s1 = scalar_lea.vmem %s81_s27, 256  ;;  %p129_p9 = scmp.lt.s32.totalorder %s81_s27, %s81_s27 }
  0x16   :  { %v31_v4 = vsel %vm30_vm0, %v28_v2, 0.0  ;;  %v34_v5 = vsel %vm30_vm0, %v29_v3, 0.0  ;;  %p125_p8 = scmp.ne.s32.totalorder %s81_s27, %s124_s1  ;;  %p130_p10 = scmp.lt.s32.totalorder %s124_s1, %s124_s1 }
  0x17   :  { %32 = vadd.xlane.f32.xlu0 %v31_v4 }
  0x18   :  { %p131_p11 = por %p130_p10, %p129_p9 }
  0x1a   :  { %p132_p12 = pnand %p131_p11, %p125_p8 }
  0x1b   :  { %35 = vadd.xlane.f32.xlu0 %v34_v5 }
  0xa4   :  { %v33_v6 = vpop.xlane.xlu0 %32 }
  0xa5   :  { %98 = vrsqrt.f32 %v33_v6  ;;  %vm39_vm1 = vcmp.eq.f32.partialorder %v33_v6, inf  ;;  %v42_v10 = vand.u32 2147483648, %v33_v6  ;;  %vm41_vm2 = vcmp.eq.f32.partialorder %v33_v6, 0.0 }
  0xa8   :  { %v36_v7 = vpop.xlane.xlu0 %35 }
  0xa9   :  { %100 = vrsqrt.f32 %v36_v7  ;;  %vm46_vm3 = vcmp.eq.f32.partialorder %v36_v7, inf  ;;  %v49_v18 = vand.u32 2147483648, %v36_v7  ;;  %vm48_vm4 = vcmp.eq.f32.partialorder %v36_v7, 0.0 }
  0xaf   :  { %v99_v8 = vpop.eup %98 }
  0xb0   :  { %v38_v9 = vmul.f32 %v99_v8, %v33_v6  ;;  %v67_v19 = vmul.f32 %v99_v8, %v93_v13 }
  0xb2   :  { %v40_v12 = vsel %vm39_vm1, %v33_v6, %v38_v9 }
  0xb3   :  { %v101_v14 = vpop.eup %100  ;;  %v43_v15 = vsel %vm41_vm2, %v42_v10, %v40_v12 }
  0xb4   :  { %v45_v16 = vmul.f32 %v101_v14, %v36_v7  ;;  %v59_v17 = vmul.f32 %v92_v11, %v43_v15  ;;  %v68_v25 = vmul.f32 %v101_v14, %v93_v13 }
  0xb6   :  { %v47_v20 = vsel %vm46_vm3, %v36_v7, %v45_v16  ;;  %vm61_vm5 = vcmp.le.f32.partialorder %v59_v17, 1e-08 }
  0xb7   :  { %v50_v21 = vsel %vm48_vm4, %v49_v18, %v47_v20  ;;  %v69_v22 = vsel %vm61_vm5, 1e+08, %v67_v19 }
  0xb8   :  { %v60_v23 = vmul.f32 %v92_v11, %v50_v21  ;;  %v71_v24 = vmul.f32 %v69_v22, %v26_v0 }
  0xba   :  { %vm62_vm6 = vcmp.le.f32.partialorder %v60_v23, 1e-08  ;;  %73 = vst.msk [vmem:[#allocation5] sm:$0xff] %vm30_vm0, %v71_v24 }
  0xbb   :  { %v70_v26 = vsel %vm62_vm6, 1e+08, %v68_v25 }
  0xbc   :  { %v72_v27 = vmul.f32 %v70_v26, %v27_v1 }
  0xbe   :  { %74 = vst.msk [vmem:[#allocation5 + $0x8] sm:$0xff] %vm30_vm0, %v72_v27 }
  0xbf   :  { %135 = shalt.err (!%p132_p12)
}
  0xc0   :  { %s136_s30 = scalar_lea.hbm %s211_s2, 256 }
  0xc1   :  { %p137_p13 = scmp.ne.s32.totalorder %s211_s2, %s136_s30  ;;  %p140_p0 = scmp.lt.u32.totalorder %s136_s30, %s211_s2 }
  0xc3   :  { %p142_p1 = pnand %p140_p0, %p137_p13 }
  0xc5   :  { %145 = shalt.err (!%p142_p1)
}
  0xc6   :  { %86 = dma.vmem_to_hbm [thread:$0]  %s81_s27, 256, %s211_s2, [#allocation4], %s151_s19, %s151_s19, %s152_s20  }
  0xc7   :  { %148 = dma.done.wait [#allocation4], 256  }
  0xc8   :  { %149 = vsyncadd [#allocation4], 4294967040 }
  0xc9   :  { %90 = vsyncpa [#allocation3], 1 }
  0xca   :  { %91 = vsyncpa [#allocation4], 1 }

</bundles_post_ra>
